<compile_context>
chip_gen: v7x
topology: tpu7x:2x2x1
jax: 0.10.0
libtpu: 0.0.40
codegen_flags: <defaults>
</compile_context>

<pallas_src>
import functools

import jax
import jax.numpy as jnp
from jax.experimental import pallas as pl
from jax.experimental.pallas import tpu as pltpu


def _channel_attention_kernel(x_ref, w1t_ref, w2t_ref, o_ref, acc_ref, *, hw_total, t_hw):
    # x_ref:   (T_n, C, T_hw)  spatial tile of the (batch-tiled) input
    # w1t_ref: (C, Ch)         first 1x1 conv weight, transposed  (Ch = C // ratio)
    # w2t_ref: (Ch, C)         second 1x1 conv weight, transposed
    # o_ref:   (T_n, C)        sigmoid(channel attention) for this batch tile
    # acc_ref: (T_n, C) f32    running spatial-sum accumulator (VMEM scratch)
    k = pl.program_id(1)
    n_hw = pl.num_programs(1)

    @pl.when(k == 0)
    def _():
        acc_ref[...] = jnp.zeros_like(acc_ref)

    x = x_ref[...]
    if hw_total % t_hw != 0:
        # Mask out-of-range spatial positions of the last (ragged) tile.
        lane = jax.lax.broadcasted_iota(jnp.int32, (1, 1, t_hw), 2) + k * t_hw
        x = jnp.where(lane < hw_total, x, jnp.zeros_like(x))

    # Native-dtype tile, float32 accumulation (no full f32 copy of the tile).
    acc_ref[...] += jnp.sum(x, axis=-1, dtype=jnp.float32)

    @pl.when(k == n_hw - 1)
    def _():
        pooled = acc_ref[...] * (1.0 / float(hw_total))                 # (T_n, C), avg pool
        w1t = w1t_ref[...].astype(jnp.float32)                          # (C, Ch)
        w2t = w2t_ref[...].astype(jnp.float32)                          # (Ch, C)
        h = jnp.maximum(
            jnp.dot(pooled, w1t, preferred_element_type=jnp.float32), 0.0)   # (T_n, Ch)
        # Both branches of the module are avg-pool -> identical MLP outputs -> sum == 2x.
        s = 2.0 * jnp.dot(h, w2t, preferred_element_type=jnp.float32)        # (T_n, C)
        o_ref[...] = (1.0 / (1.0 + jnp.exp(-s))).astype(o_ref.dtype)         # sigmoid


def channel_attention_module(x, w1, w2, *, t_hw=None, vmem_budget_bytes=8 * 1024 * 1024):
    """x: (N, C, H, W) NCHW; w1: (C//ratio, C, 1, 1); w2: (C, C//ratio, 1, 1).
    Returns sigmoid attention of shape (N, C, 1, 1), matching the PyTorch forward."""
    N, C, H, W = x.shape
    Ch = w1.shape[0]
    HW = H * W

    x3 = x.reshape(N, C, HW)
    # 1x1 convs with bias=False on (N, C, 1, 1) tensors are plain matmuls; pre-transpose (glue).
    w1t = w1.reshape(Ch, C).T          # (C, Ch)
    w2t = w2.reshape(C, Ch).T          # (Ch, C)

    # Batch tiling: >1 tile gives the "parallel" axis real work (both TCs on v7x).
    t_n = 8 if (N >= 8 and N % 8 == 0) else N
    n_tiles = N // t_n

    # Spatial tiling: multiples of 128 (or full HW), sized so the double-buffered x block
    # stays well under the scoped-VMEM default on every chip generation (incl. v7x).
    if t_hw is None:
        if HW <= 512:
            t_hw = HW
        else:
            itemsize = jnp.dtype(x.dtype).itemsize
            max_thw = max(128, vmem_budget_bytes // (2 * t_n * C * itemsize))
            t_hw = max(128, (min(HW, max_thw) // 128) * 128)
            if t_hw >= HW:
                t_hw = HW
    hw_tiles = pl.cdiv(HW, t_hw)

    kernel = functools.partial(_channel_attention_kernel, hw_total=HW, t_hw=t_hw)

    out = pl.pallas_call(
        kernel,
        out_shape=jax.ShapeDtypeStruct((N, C), x.dtype),
        grid=(n_tiles, hw_tiles),
        in_specs=[
            pl.BlockSpec((t_n, C, t_hw), lambda n, k: (n, 0, k)),
            pl.BlockSpec((C, Ch), lambda n, k: (0, 0)),   # resident: constant block index
            pl.BlockSpec((Ch, C), lambda n, k: (0, 0)),   # resident: constant block index
        ],
        out_specs=pl.BlockSpec((t_n, C), lambda n, k: (n, 0)),
        scratch_shapes=[pltpu.VMEM((t_n, C), jnp.float32)],
        compiler_params=pltpu.CompilerParams(
            dimension_semantics=("parallel", "arbitrary")),
    )(x3, w1t, w2t)
    return out.reshape(N, C, 1, 1)


def _reference(x, w1, w2):
    N, C, H, W = x.shape
    Ch = w1.shape[0]
    pooled = jnp.mean(x.astype(jnp.float32), axis=(2, 3))               # (N, C)
    def mlp(p):
        h = jnp.maximum(p @ w1.reshape(Ch, C).T.astype(jnp.float32), 0.0)
        return h @ w2.reshape(C, Ch).T.astype(jnp.float32)
    # Original module: both branches are avg-pool.
    s = mlp(pooled) + mlp(pooled)
    return jax.nn.sigmoid(s).reshape(N, C, 1, 1).astype(x.dtype)


if __name__ == "__main__":
    ratio = 16
    key = jax.random.PRNGKey(0)
    kx, k1, k2, kx2 = jax.random.split(key, 4)

    # Main small test: C must be divisible by ratio=16.
    N, C, H, W = 2, 32, 16, 16
    Ch = C // ratio  # hidden = 2
    x = jax.random.normal(kx, (N, C, H, W), dtype=jnp.float32)
    w1 = jax.random.normal(k1, (Ch, C, 1, 1), dtype=jnp.float32) * (1.0 / jnp.sqrt(C))
    w2 = jax.random.normal(k2, (C, Ch, 1, 1), dtype=jnp.float32) * (1.0 / jnp.sqrt(Ch))

    # Exercise the multi-step HW reduction path (HW=256 split into 2 tiles of 128).
    out = jax.block_until_ready(channel_attention_module(x, w1, w2, t_hw=128))
    ref = _reference(x, w1, w2)
    assert out.shape == (N, C, 1, 1)
    assert jnp.allclose(out, ref, atol=1e-5, rtol=1e-5)

    # Exercise the ragged-last-tile masking path (HW=144, tile=128 -> masked tail).
    x2 = jax.random.normal(kx2, (N, C, 12, 12), dtype=jnp.float32)
    out2 = jax.block_until_ready(channel_attention_module(x2, w1, w2, t_hw=128))
    ref2 = _reference(x2, w1, w2)
    assert jnp.allclose(out2, ref2, atol=1e-5, rtol=1e-5)

    # Exercise the default (single full-HW block) path.
    out3 = jax.block_until_ready(channel_attention_module(x, w1, w2))
    assert jnp.allclose(out3, ref, atol=1e-5, rtol=1e-5)

    print("KERNEL_OK")
</pallas_src>

<mosaic_0001>
module attributes {stable_mosaic.version = 11 : i64} {
  func.func @_channel_attention_kernel(%arg0: i32, %arg1: i32, %arg2: memref<2x32x128xf32, #tpu.memory_space<vmem>>, %arg3: memref<32x2xf32, #tpu.memory_space<vmem>>, %arg4: memref<2x32xf32, #tpu.memory_space<vmem>>, %arg5: memref<2x32xf32, #tpu.memory_space<vmem>>, %arg6: memref<2x32xf32, #tpu.memory_space<vmem>>) attributes {dimension_semantics = [#tpu.dimension_semantics<parallel>, #tpu.dimension_semantics<arbitrary>], iteration_bounds = array<i64: 1, 2>, scalar_prefetch = 0 : i64, scratch_operands = 1 : i64, tpu.core_type = #tpu.core_type<tc>, window_params = [{transform_indices = @transform_0, window_bounds = array<i64: 2, 32, 128>}, {pipeline_mode = #tpu.pipeline_mode<synchronous>, transform_indices = @transform_1, window_bounds = array<i64: 32, 2>}, {pipeline_mode = #tpu.pipeline_mode<synchronous>, transform_indices = @transform_2, window_bounds = array<i64: 2, 32>}, {transform_indices = @transform_3, window_bounds = array<i64: 2, 32>}]} {
    %c0_i32 = arith.constant 0 : i32
    %0 = arith.cmpi eq, %arg1, %c0_i32 : i32
    %1 = arith.extui %0 : i1 to i32
    %c0_i32_0 = arith.constant 0 : i32
    %2 = arith.cmpi ne, %1, %c0_i32_0 : i32
    scf.if %2 {
      %cst_8 = arith.constant 0.000000e+00 : f32
      %11 = vector.broadcast %cst_8 : f32 to vector<2x32xf32>
      %c0_9 = arith.constant 0 : index
      %c0_10 = arith.constant 0 : index
      %12 = vector.load %arg6[%c0_9, %c0_10] : memref<2x32xf32, #tpu.memory_space<vmem>>, vector<2x32xf32>
      tpu.vector_store %arg6[%c0_9, %c0_10], %11 {strides = array<i32>} : memref<2x32xf32, #tpu.memory_space<vmem>>, vector<2x32xf32>,
    } else {
    }
    %c0 = arith.constant 0 : index
    %c0_1 = arith.constant 0 : index
    %c0_2 = arith.constant 0 : index
    %3 = vector.load %arg2[%c0, %c0_1, %c0_2] : memref<2x32x128xf32, #tpu.memory_space<vmem>>, vector<2x32x128xf32>
    %c0_3 = arith.constant 0 : index
    %c0_4 = arith.constant 0 : index
    %4 = vector.load %arg6[%c0_3, %c0_4] : memref<2x32xf32, #tpu.memory_space<vmem>>, vector<2x32xf32>
    %cst = arith.constant dense<0.000000e+00> : vector<2x32xf32>
    %5 = vector.multi_reduction <add>, %3, %cst [2] : vector<2x32x128xf32> to vector<2x32xf32>
    %6 = arith.addf %4, %5 : vector<2x32xf32>
    %c0_5 = arith.constant 0 : index
    %c0_6 = arith.constant 0 : index
    %7 = vector.load %arg6[%c0_5, %c0_6] : memref<2x32xf32, #tpu.memory_space<vmem>>, vector<2x32xf32>
    tpu.vector_store %arg6[%c0_5, %c0_6], %6 {strides = array<i32>} : memref<2x32xf32, #tpu.memory_space<vmem>>, vector<2x32xf32>,
    %c1_i32 = arith.constant 1 : i32
    %8 = arith.cmpi eq, %arg1, %c1_i32 : i32
    %9 = arith.extui %8 : i1 to i32
    %c0_i32_7 = arith.constant 0 : i32
    %10 = arith.cmpi ne, %9, %c0_i32_7 : i32
    scf.if %10 {
      %c0_8 = arith.constant 0 : index
      %c0_9 = arith.constant 0 : index
      %11 = vector.load %arg6[%c0_8, %c0_9] : memref<2x32xf32, #tpu.memory_space<vmem>>, vector<2x32xf32>
      %cst_10 = arith.constant 3.906250e-03 : f32
      %12 = vector.broadcast %cst_10 : f32 to vector<2x32xf32>
      %13 = arith.mulf %11, %12 : vector<2x32xf32>
      %c0_11 = arith.constant 0 : index
      %c0_12 = arith.constant 0 : index
      %14 = vector.load %arg3[%c0_11, %c0_12] : memref<32x2xf32, #tpu.memory_space<vmem>>, vector<32x2xf32>
      %c0_13 = arith.constant 0 : index
      %c0_14 = arith.constant 0 : index
      %15 = vector.load %arg4[%c0_13, %c0_14] : memref<2x32xf32, #tpu.memory_space<vmem>>, vector<2x32xf32>
      %cst_15 = arith.constant dense<0.000000e+00> : vector<2x2xf32>
      %16 = tpu.matmul %13, %14, %cst_15 {dimension_numbers = #tpu.dot_dimension_numbers<[1], [0], [0], [1], [0, 0, 1, 1], [], []>} : vector<2x32xf32>, vector<32x2xf32>, vector<2x2xf32> -> vector<2x2xf32>
      %cst_16 = arith.constant 0.000000e+00 : f32
      %17 = vector.broadcast %cst_16 : f32 to vector<2x2xf32>
      %18 = arith.maximumf %16, %17 : vector<2x2xf32>
      %cst_17 = arith.constant dense<0.000000e+00> : vector<2x32xf32>
      %19 = tpu.matmul %18, %15, %cst_17 {dimension_numbers = #tpu.dot_dimension_numbers<[1], [0], [0], [1], [0, 0, 1, 1], [], []>} : vector<2x2xf32>, vector<2x32xf32>, vector<2x32xf32> -> vector<2x32xf32>
      %cst_18 = arith.constant 2.000000e+00 : f32
      %20 = vector.broadcast %cst_18 : f32 to vector<2x32xf32>
      %21 = arith.mulf %20, %19 : vector<2x32xf32>
      %cst_19 = arith.constant 0.000000e+00 : f32
      %22 = vector.broadcast %cst_19 : f32 to vector<2x32xf32>
      %23 = arith.subf %22, %21 : vector<2x32xf32>
      %24 = math.exp %23 : vector<2x32xf32>
      %cst_20 = arith.constant 1.000000e+00 : f32
      %25 = vector.broadcast %cst_20 : f32 to vector<2x32xf32>
      %26 = arith.addf %25, %24 : vector<2x32xf32>
      %cst_21 = arith.constant 1.000000e+00 : f32
      %27 = vector.broadcast %cst_21 : f32 to vector<2x32xf32>
      %28 = arith.divf %27, %26 : vector<2x32xf32>
      %c0_22 = arith.constant 0 : index
      %c0_23 = arith.constant 0 : index
      %29 = vector.load %arg5[%c0_22, %c0_23] : memref<2x32xf32, #tpu.memory_space<vmem>>, vector<2x32xf32>
      tpu.vector_store %arg5[%c0_22, %c0_23], %28 {strides = array<i32>} : memref<2x32xf32, #tpu.memory_space<vmem>>, vector<2x32xf32>,
    } else {
    }
    return
  }
  func.func @transform_0(%arg0: i32, %arg1: i32) -> (i32, i32, i32) {
    %c0_i32 = arith.constant 0 : i32
    %c0_i32_0 = arith.constant 0 : i32
    return %arg0, %c0_i32, %arg1 : i32, i32, i32
  }
  func.func @transform_1(%arg0: i32, %arg1: i32) -> (i32, i32) {
    %c0_i32 = arith.constant 0 : i32
    %c0_i32_0 = arith.constant 0 : i32
    %c0_i32_1 = arith.constant 0 : i32
    return %c0_i32, %c0_i32_0 : i32, i32
  }
  func.func @transform_2(%arg0: i32, %arg1: i32) -> (i32, i32) {
    %c0_i32 = arith.constant 0 : i32
    %c0_i32_0 = arith.constant 0 : i32
    %c0_i32_1 = arith.constant 0 : i32
    return %c0_i32, %c0_i32_0 : i32, i32
  }
  func.func @transform_3(%arg0: i32, %arg1: i32) -> (i32, i32) {
    %c0_i32 = arith.constant 0 : i32
    %c0_i32_0 = arith.constant 0 : i32
    return %arg0, %c0_i32 : i32, i32
  }
}

</mosaic_0001>

<bundles_post_ra>
// kernel: tpu_custom_call.1
= control target key start
LH: loop header
LB: loop body
LE: loop exit
PB: predicated region body
PF: predicated region fallthrough
CT: control target
= control target key end

     0   :  { %8 = vsyncpa [#allocation4], 0  ;;  %s963_s0 = inlined_call_operand.hbm [shape: f32[2,32,256], index: 0, kind: input, shape index: {}]   ;;  %s964_s1 = inlined_call_operand.vmem [shape: f32[32,2], index: 1, kind: input, shape index: {}]   ;;  %s965_s2 = inlined_call_operand.vmem [shape: f32[2,32], index: 2, kind: input, shape index: {}]   ;;  %s966_s3 = inlined_call_operand.hbm [shape: f32[2,32], index: 3, kind: output, shape index: {}]  }
   0x1   :  { %10 = vsyncpa [#allocation4 + $0x1], 0 }
   0x2   :  { %11 = vsyncpa [#allocation5], 0  ;;  %s793_s12 = smov 0   ;;  %s795_s13 = smov 0  }
   0x3   :  { %s797_s14 = smov 0   ;;  %s799_s15 = smov 0  }
   0x4   :  { %s801_s16 = smov 0   ;;  %s803_s17 = smov 0  }
   0x5 LB: > { %s534_s18 = sadd.s32 4294967295, %s762_s17   ;;  %s26_s19 = sadd.s32 1, %s758_s16  ;;  %s762_s17 = sphi %s803_s17, %s17_s17   ;;  %s758_s16 = sphi %s801_s16, %s976_s16   ;;  %s754_s15 = sphi %s799_s15, %s975_s15   ;;  %s750_s14 = sphi %s797_s14, %s974_s14   ;;  %s746_s13 = sphi %s795_s13, %s973_s13   ;;  %s742_s12 = sphi %s793_s12, %s972_s12  }
   0x6   : > { %p27_p0 = scmp.ge.s32.totalorder %s26_s19, 2  ;;  %s38_s20 = sadd.s32 1, %s750_s14 }
   0x7   : > { %p45_p1 = scmp.ne.s32.totalorder %s750_s14, %s746_s13  ;;  %p46_p2 = scmp.eq.s32.totalorder %s762_s17, 0 }
   0x8   : > { %s978_s19 = smov (%p27_p0, %s26_s19), 0  ;;  %p51_p4 = scmp.ne.s32.totalorder %s746_s13, %s742_s12 }
   0x9   : > { %p829_p3 = por %p46_p2, %p45_p1  ;;  %s34_s22 = ssub.s32 %s758_s16, %s978_s19 }
   0xa   : > { %p52_p5 = scmp.eq.s32.totalorder %s534_s18, 0  ;;  %p36_p6 = scmp.eq.s32.totalorder %s34_s22, 0 }
   0xb   : > { %p589_p8 = scmp.lt.s32.totalorder %s762_s17, 2  ;;  %s149_s25 = sand.u32 1, %s750_s14  }
   0xc   : > { %p838_p7 = por %p52_p5, %p51_p4  ;;  %s538_s26 = sshll.u32 %s758_s16, 7 }
   0xd   : > { %s844_s24 = scalar_select %p36_p6, %s750_s14, %s38_s20  }
   0xe   : > { %s537_s27 = sshll.u32 %s149_s25, 6  ;;  %s851_s30 = scalar_lea.hbm %s963_s0, %s538_s26 }
   0xf   : > { %s153_s4 = scalar_lea.vmem [#allocation3], %s537_s27  ;;  %p855_p9 = pnand %p589_p8, %p829_p3 }
  0x10   : > { %s162_s5 = sshll.u32 %s153_s4, 4  ;;  %s862_s7 = scalar_lea.sflag [#allocation4], %s149_s25  ;;  %s859_s5 = int_to_ptr.vmem [resolvable:$true] %s162_s5 }
  0x11   : > { %s652_s8 = scalar_lea.hbm %s851_s30, 1024  ;;  %p654_p12 = pneg %p855_p9 }
  0x12   : > { %p653_p11 = scmp.ne.s32.totalorder %s851_s30, %s652_s8  ;;  %s657_s11 = scalar_lea.hbm %s963_s0, 2048 }
  0x13   : > { %p658_p1 = scmp.lt.u32.totalorder %s851_s30, %s963_s0  ;;  %p659_p2 = scmp.lt.u32.totalorder %s657_s11, %s652_s8 }
  0x14   : > { %p655_p13 = pnand %p654_p12, %p653_p11  ;;  %p661_p4 = scmp.lt.u32.totalorder %s652_s8, %s851_s30 }
  0x15   : > { %p660_p3 = por %p659_p2, %p658_p1 }
  0x16   : > { %p656_p0 = pneg %p655_p13 }
  0x17   : > { %p662_p5 = por %p661_p4, %p660_p3 }
  0x19   : > { %p663_p6 = pnand %p662_p5, %p656_p0 }
  0x1b   : > { %666 = shalt.err (!%p663_p6)
}
  0x1c   : > { %s667_s21 = scalar_lea.vmem %s859_s5, 1024  ;;  %s764_s22 = smov [#allocation3]  }
  0x1d   : > { %p668_p8 = scmp.ne.s32.totalorder %s859_s5, %s667_s21  ;;  %s672_s25 = sshll.u32 %s764_s22, 4  ;;  %s673_s25 = int_to_ptr.vmem [resolvable:$false] %s672_s25 }
  0x1e   : > { %s674_s26 = scalar_lea.vmem %s673_s25, 2048  ;;  %p675_p10 = scmp.lt.s32.totalorder %s859_s5, %s673_s25 }
  0x1f   : > { %p670_p11 = pnand %p668_p8, %p654_p12  ;;  %p676_p1 = scmp.lt.s32.totalorder %s674_s26, %s667_s21 }
  0x21   : > { %p671_p13 = pneg %p670_p11  ;;  %p677_p2 = por %p676_p1, %p675_p10 }
  0x23   : > { %p678_p3 = pnand %p677_p2, %p671_p13 }
  0x25   : > { %681 = shalt.err (!%p678_p3)
}
  0x26   : > { %s765_s27 = smov 256   ;;  %s766_s28 = smov 128  }
  0x27   : > { %s767_s29 = smov 8   ;;  %p170_p12 = scmp.lt.s32.totalorder %s762_s17, 3 }
  0x28   : > { %588 = dma.hbm_to_vmem [thread:$0]  (!%p855_p9), %s851_s30, 1024, %s859_s5, %s862_s7, %s765_s27, %s766_s28, %s767_s29  }
  0x29   : > { %p970_p0 = scmp.ge.s32.totalorder %s762_s17, 1 }
  0x2b   : > { %p171_p4 = pnand %p970_p0, %p170_p12 }
  0x2c   : > { %s176_s4 = sand.u32 (!%p171_p4), 1, %s746_s13  }
  0x2d   : > { %174 = sbr.rel (%p171_p4) target bundleno = 716 (0x2cc), region = 32  ;;  %s540_s8 = sshll.u32 (!%p171_p4), %s176_s4, 6 }
  0x2e   : > { %s177_s9 = scalar_lea.sflag (!%p171_p4), [#allocation4], %s176_s4  ;;  %s180_s10 = scalar_lea.vmem (!%p171_p4), [#allocation3], %s540_s8 }
  0x34   : > { %733 = dma.done.wait (%p838_p7), %s177_s9, 1024  }
  0x35   : > { %735 = vsyncadd (%p838_p7), %s177_s9, 4294966272  ;;  %p541_p10 = scmp.ne.s32.totalorder %s754_s15, 0 }
  0x36   : > { %vm203_vm0 = vcmask (!%p541_p10), 254976   ;;  %v768_v0 = vmov (!%p541_p10), 0.0  }
  0x37   : > { %202 = sbr.rel (%p541_p10) target bundleno = 62 (0x3e), region = 40  ;;  %204 = vst.msk [vmem:[#allocation2] sm:$0x3] (!%p541_p10), %vm203_vm0, %v768_v0 }
  0x3e PF: > { %v209_v1 = vld [vmem:[%s180_s10 + $0x20] sm:$0xff]  ;;  %v210_v3 = vld [vmem:[%s180_s10 + $0x28] sm:$0xff]  ;;  %v211_v5 = vld [vmem:[%s180_s10 + $0x30] sm:$0xff]  ;;  %v238_v9 = vlaneseq  ;;  %vm249_vm1 = vcmask 130112   ;;  %vm256_vm2 = vcmask 195712   ;;  %vm263_vm3 = vcmask 261312  }
  0x3f   : > { %v205_v2 = vld [vmem:[%s180_s10] sm:$0xff]  ;;  %222 = vadd.xlane.f32.xlu1 %v209_v1  ;;  %v206_v4 = vld [vmem:[%s180_s10 + $0x8] sm:$0xff]  ;;  %v207_v6 = vld [vmem:[%s180_s10 + $0x10] sm:$0xff]  ;;  %vm284_vm4 = vcmask 1041409   ;;  %vm288_vm5 = vcmask 254976   ;;  %p542_p7 = scmp.ne.s32.totalorder %s754_s15, 1 }
  0x40   : > { %214 = vadd.xlane.f32.xlu0 %v205_v2  ;;  %v212_v7 = vld [vmem:[%s180_s10 + $0x38] sm:$0xff]  ;;  %v239_v10 = vand.u32 127, %v238_v9  ;;  %v241_v15 = vshrl.u32 %v238_v9, 7  ;;  %v297_v45 = vld [vmem:[%s964_s1 + $0x8] sm:$0xff] (!%p542_p7)  ;;  %v298_v46 = vld [vmem:[%s964_s1 + $0x10] sm:$0xff] (!%p542_p7)  ;;  %v769_v47 = vmov (!%p542_p7), 0.0|0.0  }
  0x41   : > { %v208_v8 = vld [vmem:[%s180_s10 + $0x18] sm:$0xff]  ;;  %573 = vmatprep.subr.bf16.mxu0 (!%p542_p7), %v769_v47  ;;  %vm770_vm6 = vmmov (!%p542_p7), 0   ;;  %v771_v50 = vmov (!%p542_p7), 0.0   ;;  %vm301_vm7 = vcmask (!%p542_p7), 261120   ;;  %vm380_vm8 = vcmask (!%p542_p7), 1041408  }
  0x42   : > { %v244_v13 = vadd.s32 4294967288, %v239_v10  ;;  %v251_v14 = vadd.s32 4294967280, %v239_v10  ;;  %v258_v19 = vadd.s32 4294967272, %v239_v10  ;;  %v242_v21 = vsub.s32 %v239_v10, %v241_v15  ;;  %v213_v39 = vld [vmem:[#allocation2] sm:$0x3]  ;;  %v299_v49 = vld [vmem:[%s964_s1 + $0x18] sm:$0xff] (!%p542_p7)  ;;  %565 = vmatprep.mubr.msk.f32.mxu0 (!%p542_p7), %vm770_vm6, %v771_v50  ;;  %568 = vmatprep.subr.mxu1 (!%p542_p7), %v771_v50 }
  0x43   : > { %224 = vadd.xlane.f32.xlu1 %v210_v3  ;;  %v296_v44 = vld [vmem:[%s964_s1] sm:$0xff] (!%p542_p7)  ;;  %570 = vmatprep.mubr.msk.f32.mxu1 (!%p542_p7), %vm770_vm6, %v771_v50  ;;  %v577_v51 = vpack.c.bf16 (!%p542_p7), %v299_v49, %v298_v46  ;;  %vm376_vm9 = vcmask (!%p542_p7), 15360  }
  0x44   : > { %216 = vadd.xlane.f32.xlu0 %v206_v4  ;;  %v247_v18 = vsub.s32 %v244_v13, %v241_v15  ;;  %v254_v20 = vsub.s32 %v251_v14, %v241_v15  ;;  %v261_v26 = vsub.s32 %v258_v19, %v241_v15  ;;  %v574_v48 = vpack.c.bf16 (!%p542_p7), %v297_v45, %v296_v44  ;;  %v300_v54 = vld [vmem:[%s965_s2] sm:$0x3] (!%p542_p7) }
  0x45   : > { %569 = vmatpush3.msk.msra.mxu1 (!%p542_p7), %vm380_vm8, %v300_v54 }
  0x46   : > { %575 = vmatpush3.bf16.msra.mxu0 (!%p542_p7), %v574_v48 }
  0x47   : > { %226 = vadd.xlane.f32.xlu1 %v211_v5  ;;  %576 = vmatprep.subr.bf16.mxu0 (!%p542_p7), %v769_v47 }
  0x48   : > { %218 = vadd.xlane.f32.xlu0 %v207_v6 }
  0x4a   : > { %578 = vmatpush3.bf16.msra.mxu0 (!%p542_p7), %v577_v51 }
  0x4b   : > { %228 = vadd.xlane.f32.xlu1 %v212_v7 }
  0x4c   : > { %220 = vadd.xlane.f32.xlu0 %v208_v8 }
  0xcc   : > { %v223_v11 = vpop.xlane.xlu1 %222 }
  0xcd   : > { %v215_v12 = vpop.xlane.xlu0 %214  ;;  %v268_v29 = vrot.slane %v223_v11, %v242_v21 }
  0xce   : > { %v243_v30 = vrot.slane %v215_v12, %v242_v21 }
  0xd0   : > { %v225_v16 = vpop.xlane.xlu1 %224 }
  0xd1   : > { %v217_v17 = vpop.xlane.xlu0 %216  ;;  %v272_v24 = vrot.slane %v225_v16, %v247_v18 }
  0xd2   : > { %v248_v25 = vrot.slane %v217_v17, %v247_v18 }
  0xd3   : > { %v273_v33 = vsel %vm249_vm1, %v272_v24, %v268_v29 }
  0xd4   : > { %v227_v22 = vpop.xlane.xlu1 %226  ;;  %v250_v34 = vsel %vm249_vm1, %v248_v25, %v243_v30 }
  0xd5   : > { %v219_v23 = vpop.xlane.xlu0 %218  ;;  %v277_v27 = vrot.slane %v227_v22, %v254_v20 }
  0xd6   : > { %v255_v28 = vrot.slane %v219_v23, %v254_v20 }
  0xd7   : > { %v278_v37 = vsel %vm256_vm2, %v277_v27, %v273_v33 }
  0xd8   : > { %v229_v31 = vpop.xlane.xlu1 %228  ;;  %v257_v38 = vsel %vm256_vm2, %v255_v28, %v250_v34 }
  0xd9   : > { %v221_v32 = vpop.xlane.xlu0 %220  ;;  %v282_v35 = vrot.slane %v229_v31, %v261_v26 }
  0xda   : > { %v262_v36 = vrot.slane %v221_v32, %v261_v26  ;;  %293 = sbr.rel (%p542_p7) target bundleno = 691 (0x2b3), region = 44 }
  0xdb   : > { %v283_v40 = vsel %vm263_vm3, %v282_v35, %v278_v37 }
  0xdc   : > { %v264_v41 = vsel %vm263_vm3, %v262_v36, %v257_v38 }
  0xdd   : > { %v285_v42 = vsel %vm284_vm4, %v283_v40, %v264_v41 }
  0xde   : > { %v287_v43 = vadd.f32 %v285_v42, %v213_v39 }
  0xe0   : > { %289 = vst.msk [vmem:[#allocation2] sm:$0x3] %vm288_vm5, %v287_v43 }
  0xe7   : > { %v294_v52 = vld [vmem:[#allocation2] sm:$0x3] }
  0xe8   : > { %v295_v53 = vmul.f32 0.00390625, %v294_v52 }
  0xea   : > { %566 = vmatmul.mubr.msk.f32.vlgmr.msra.gmra.mrb[0].mxu0 %vm301_vm7, %v295_v53 }
 0x1bd   : > { %v371_v55 = vpop.f32.mrb[0].mxu0 }
 0x1be   : > { %v375_v56 = vmax.f32 %v371_v55, 0.0  ;;  %v567_v57 = vpop.f32.mrb[1].mxu0 }
 0x1c0   : > { %571 = vmatmul.mubr.msk.f32.vlgmr.msra.gmra.mrb[0].mxu1 %vm376_vm9, %v375_v56 }
 0x293   : > { %v450_v58 = vpop.f32.mrb[0].mxu1 }
 0x294   : > { %v454_v59 = vmul.f32 2.0, %v450_v58  ;;  %v572_v60 = vpop.f32.mrb[1].mxu1 }
 0x296   : > { %v455_v61 = vsub.f32 0.0, %v454_v59 }
 0x298   : > { %v456_v62 = vmul.f32 1.442695, %v455_v61 }
 0x29a   : > { %648 = vpow2.f32 %v456_v62 }
 0x2a4   : > { %v649_v63 = vpop.eup %648 }
 0x2a5   : > { %v458_v0 = vadd.f32 1.0, %v649_v63 }
 0x2a7   : > { %650 = vrcp.f32 %v458_v0 }
 0x2b1   : > { %v651_v1 = vpop.eup %650 }
 0x2b2   : > { %461 = vst.msk [vmem:[#allocation6] sm:$0x3] %vm288_vm5, %v651_v1 }
 0x2b3 PF: > { %p919_p9 = scmp.eq.s32.totalorder %s534_s18, 1  ;;  %s772_s25 = smov [#allocation6]  }
 0x2b4   : > { %s471_s26 = sshll.u32 %s772_s25, 4  ;;  %s472_s26 = int_to_ptr.vmem [resolvable:$true] %s471_s26 }
 0x2b5   : > { %s682_s27 = scalar_lea.vmem %s472_s26, 32  ;;  %p689_p11 = scmp.lt.s32.totalorder %s472_s26, %s472_s26 }
 0x2b6   : > { %p683_p5 = scmp.ne.s32.totalorder %s472_s26, %s682_s27  ;;  %p690_p13 = scmp.lt.s32.totalorder %s682_s27, %s682_s27 }
 0x2b8   : > { %p684_p6 = pnand %p683_p5, %p919_p9  ;;  %p691_p1 = por %p690_p13, %p689_p11 }
 0x2ba   : > { %p685_p8 = pneg %p684_p6 }
 0x2bc   : > { %p692_p2 = pnand %p691_p1, %p685_p8 }
 0x2be   : > { %695 = shalt.err (!%p692_p2)
}
 0x2bf   : > { %s696_s18 = scalar_lea.hbm %s966_s3, 32 }
 0x2c0   : > { %p697_p3 = scmp.ne.s32.totalorder %s966_s3, %s696_s18  ;;  %p702_p4 = scmp.lt.u32.totalorder %s696_s18, %s966_s3 }
 0x2c2   : > { %p698_p12 = pnand %p697_p3, %p919_p9 }
 0x2c4   : > { %p699_p0 = pneg %p698_p12 }
 0x2c6   : > { %p704_p10 = pnand %p702_p4, %p699_p0 }
 0x2c8   : > { %707 = shalt.err (!%p704_p10)
}
 0x2c9   : > { %582 = dma.vmem_to_hbm [thread:$0]  (%p919_p9), %s472_s26, 32, %s966_s3, [#allocation5]  }
 0x2ca   : > { %737 = dma.done.wait (%p919_p9), [#allocation5], 32  }
 0x2cb   : > { %739 = vsyncadd (%p919_p9), [#allocation5], 4294967264 }
 0x2cc PF: > { %s17_s17 = sadd.s32 1, %s762_s17   ;;  %s972_s12 = smov %s746_s13 }
 0x2cd   : > { %p14_p7 = scmp.ge.s32.totalorder %s17_s17, 4   ;;  %s973_s13 = smov %s750_s14 }
 0x2ce   : > { %s974_s14 = smov %s844_s24  ;;  %s975_s15 = smov %s758_s16 }
 0x2cf   : > { %s976_s16 = smov %s978_s19  ;;  %16 = sbr.rel (!%p14_p7) target bundleno = 5 (0x5), region = 78 }
 0x2d6   :  { %484 = vsyncpa [#allocation4], 1 }
 0x2d7   :  { %486 = vsyncpa [#allocation4 + $0x1], 1 }
 0x2d8   :  { %487 = vsyncpa [#allocation5], 1 }
 0x2d9   :  { %489 = vsyncpa [#allocation5 + $0x1], 1 }

</bundles_post_ra>
